<compile_context>
chip_gen: v6e
topology: v6e:2x2x1
jax: 0.10.0
libtpu: 0.0.40
codegen_flags: <defaults>
</compile_context>

<pallas_src>
import jax
import jax.numpy as jnp
from jax.experimental import pallas as pl
from jax.experimental.pallas import tpu as pltpu

IN_FEATURES = 784
HIDDEN = 50
OUT_FEATURES = 10

HIDDEN_PAD = 128   # lane-dense hidden width (zero-padded)
OUT_PAD = 16       # narrow output writeback (sliced to 10 in the wrapper)

# Default batch tile.  bf16 streaming: ~16 MiB total VMEM at tb=4096 (fits the
# 32 MiB scoped default on every generation); f32 streaming: ~29 MiB (vmem
# limit is bumped automatically below when needed).
DEFAULT_TILE_B = 4096


def _round_up(n, m):
    return ((n + m - 1) // m) * m


def mlp_kernel(x_ref, w1_ref, b1_ref, w2_ref, b2_ref, o_ref):
    # x_ref:  (tb, 784)  [stream dtype]     w1_ref: (784, 128) [stream dtype]
    # b1_ref: (1, 128) f32                  w2_ref: (128, 16) f32
    # b2_ref: (1, 16) f32                   o_ref:  (tb, 16) f32
    h = jnp.dot(x_ref[...], w1_ref[...], preferred_element_type=jnp.float32)
    h = jnp.maximum(h + b1_ref[...], 0.0)                       # bias + ReLU on VPU
    o = jnp.dot(h, w2_ref[...], preferred_element_type=jnp.float32) + b2_ref[...]
    o_ref[...] = o.astype(o_ref.dtype)


def prepare_params(w1, b1, w2, b2, *, stream_dtype=jnp.bfloat16):
    """One-time param prep (hoisted out of the forward pass).

    w1: (784, 50), b1: (50,), w2: (50, 10), b2: (10,)  (transposed vs PyTorch).
    Zero-padding HIDDEN->128 and OUT->16 preserves the math exactly; W1 is cast
    to `stream_dtype` (bf16 by default) to match the streamed x dtype.
    """
    w1p = jnp.zeros((IN_FEATURES, HIDDEN_PAD), jnp.float32).at[:, :HIDDEN].set(w1)
    b1p = jnp.zeros((1, HIDDEN_PAD), jnp.float32).at[:, :HIDDEN].set(b1)
    w2p = jnp.zeros((HIDDEN_PAD, OUT_PAD), jnp.float32).at[:HIDDEN, :OUT_FEATURES].set(w2)
    b2p = jnp.zeros((1, OUT_PAD), jnp.float32).at[:, :OUT_FEATURES].set(b2)
    return w1p.astype(stream_dtype), b1p, w2p, b2p


def net_forward(x, params, *, tile_b=DEFAULT_TILE_B):
    """Forward pass.  x: any shape whose trailing dims flatten to 784.

    params: output of prepare_params().  For peak bandwidth pass x already in
    the streaming dtype (e.g. bf16) to avoid one wrapper-side cast pass.
    """
    w1p, b1p, w2p, b2p = params
    stream_dtype = w1p.dtype

    x2d = x.reshape(-1, IN_FEATURES)                             # torch: x.view(-1, 784)
    if x2d.dtype != stream_dtype:
        x2d = x2d.astype(stream_dtype)
    batch = x2d.shape[0]

    # Batch tile: sublane-aligned, and capped so the grid has >= 2 steps when
    # possible (lets v7x megacore shard batch tiles across both TensorCores).
    tb = max(8, min(tile_b, _round_up(pl.cdiv(batch, 2), 8)))
    grid = (pl.cdiv(batch, tb),)        # ragged tail block is masked by Pallas

    itemsize = jnp.dtype(stream_dtype).itemsize
    # Advisory cost estimate (kernel-side traffic only).
    cost = pl.CostEstimate(
        flops=2 * batch * IN_FEATURES * HIDDEN + 2 * batch * HIDDEN * OUT_FEATURES,
        transcendentals=0,
        bytes_accessed=(batch * IN_FEATURES * itemsize
                        + w1p.size * itemsize + b1p.size * 4
                        + w2p.size * 4 + b2p.size * 4
                        + batch * OUT_PAD * 4),
    )

    # Scoped-VMEM budget: double-buffered x/out + resident params + f32 hidden.
    vmem_est = (2 * (tb * IN_FEATURES * itemsize
                     + tb * OUT_PAD * 4
                     + w1p.size * itemsize + b1p.size * 4
                     + w2p.size * 4 + b2p.size * 4)
                + tb * HIDDEN_PAD * 4)
    vmem_limit = min(100 * 2**20, max(32 * 2**20, int(vmem_est * 1.25)))

    out = pl.pallas_call(
        mlp_kernel,
        out_shape=jax.ShapeDtypeStruct((batch, OUT_PAD), jnp.float32),
        grid=grid,
        in_specs=[
            pl.BlockSpec((tb, IN_FEATURES), lambda i: (i, 0)),          # x (streamed)
            pl.BlockSpec((IN_FEATURES, HIDDEN_PAD), lambda i: (0, 0)),  # W1 (resident)
            pl.BlockSpec((1, HIDDEN_PAD), lambda i: (0, 0)),            # b1 (resident)
            pl.BlockSpec((HIDDEN_PAD, OUT_PAD), lambda i: (0, 0)),      # W2 (resident)
            pl.BlockSpec((1, OUT_PAD), lambda i: (0, 0)),               # b2 (resident)
        ],
        out_specs=pl.BlockSpec((tb, OUT_PAD), lambda i: (i, 0)),        # narrow out
        compiler_params=pltpu.CompilerParams(
            dimension_semantics=("parallel",),                          # v7x megacore
            vmem_limit_bytes=vmem_limit,
        ),
        cost_estimate=cost,
    )(x2d, w1p, b1p, w2p, b2p)

    return out[:, :OUT_FEATURES]


def init_params(key):
    """Deterministic init mimicking PyTorch nn.Linear default (uniform +-1/sqrt(fan_in)).
    Weights are returned transposed: (in_features, out_features)."""
    k1, k2, k3, k4 = jax.random.split(key, 4)
    bound1 = 1.0 / jnp.sqrt(jnp.float32(IN_FEATURES))
    bound2 = 1.0 / jnp.sqrt(jnp.float32(HIDDEN))
    w1 = jax.random.uniform(k1, (IN_FEATURES, HIDDEN), jnp.float32, -bound1, bound1)
    b1 = jax.random.uniform(k2, (HIDDEN,), jnp.float32, -bound1, bound1)
    w2 = jax.random.uniform(k3, (HIDDEN, OUT_FEATURES), jnp.float32, -bound2, bound2)
    b2 = jax.random.uniform(k4, (OUT_FEATURES,), jnp.float32, -bound2, bound2)
    return w1, b1, w2, b2


def _reference(x, w1, b1, w2, b2):
    x2d = x.reshape(-1, IN_FEATURES)
    return jnp.maximum(x2d @ w1 + b1, 0.0) @ w2 + b2


if __name__ == "__main__":
    key = jax.random.PRNGKey(0)
    k_x, k_x2, k_p = jax.random.split(key, 3)
    w1, b1, w2, b2 = init_params(k_p)

    # Small MNIST-like batch: (B, C, H, W) = (8, 1, 28, 28) -> flattens to (8, 784)
    x = jax.random.normal(k_x, (8, 1, 28, 28), dtype=jnp.float32)
    ref = _reference(x, w1, b1, w2, b2)

    # Full-precision f32 path: exact vs reference.
    params_f32 = prepare_params(w1, b1, w2, b2, stream_dtype=jnp.float32)
    out_f32 = jax.block_until_ready(net_forward(x, params_f32))
    assert out_f32.shape == (8, OUT_FEATURES)
    assert jnp.allclose(out_f32, ref, atol=1e-4, rtol=1e-4)

    # Default fast path: bf16-streamed x / W1 with f32 accumulation.
    params = prepare_params(w1, b1, w2, b2)        # stream_dtype = bf16
    out_bf16 = jax.block_until_ready(net_forward(x, params))
    assert out_bf16.shape == (8, OUT_FEATURES)
    assert jnp.allclose(out_bf16, ref, atol=5e-2, rtol=5e-2)

    # Ragged batch (13 rows): exercises the masked tail block (no jnp.pad of x)
    # and a multi-step ("parallel") grid.
    x_odd = jax.random.normal(k_x2, (13, 1, 28, 28), dtype=jnp.float32)
    out_odd = jax.block_until_ready(net_forward(x_odd, params_f32))
    ref_odd = _reference(x_odd, w1, b1, w2, b2)
    assert out_odd.shape == (13, OUT_FEATURES)
    assert jnp.allclose(out_odd, ref_odd, atol=1e-4, rtol=1e-4)

    print("KERNEL_OK")
</pallas_src>

<mosaic_0001>
module attributes {stable_mosaic.version = 11 : i64} {
  func.func @mlp_kernel(%arg0: i32, %arg1: memref<8x784xf32, #tpu.memory_space<vmem>>, %arg2: memref<784x128xf32, #tpu.memory_space<vmem>>, %arg3: memref<1x128xf32, #tpu.memory_space<vmem>>, %arg4: memref<128x16xf32, #tpu.memory_space<vmem>>, %arg5: memref<1x16xf32, #tpu.memory_space<vmem>>, %arg6: memref<8x16xf32, #tpu.memory_space<vmem>>) attributes {dimension_semantics = [#tpu.dimension_semantics<parallel>], iteration_bounds = array<i64: 1>, scalar_prefetch = 0 : i64, scratch_operands = 0 : i64, tpu.core_type = #tpu.core_type<tc>, window_params = [{transform_indices = @transform_0, window_bounds = array<i64: 8, 784>}, {pipeline_mode = #tpu.pipeline_mode<synchronous>, transform_indices = @transform_1, window_bounds = array<i64: 784, 128>}, {pipeline_mode = #tpu.pipeline_mode<synchronous>, transform_indices = @transform_2, window_bounds = array<i64: 1, 128>}, {pipeline_mode = #tpu.pipeline_mode<synchronous>, transform_indices = @transform_3, window_bounds = array<i64: 128, 16>}, {pipeline_mode = #tpu.pipeline_mode<synchronous>, transform_indices = @transform_4, window_bounds = array<i64: 1, 16>}, {transform_indices = @transform_5, window_bounds = array<i64: 8, 16>}]} {
    %c0 = arith.constant 0 : index
    %c0_0 = arith.constant 0 : index
    %0 = vector.load %arg1[%c0, %c0_0] : memref<8x784xf32, #tpu.memory_space<vmem>>, vector<8x784xf32>
    %c0_1 = arith.constant 0 : index
    %c0_2 = arith.constant 0 : index
    %1 = vector.load %arg2[%c0_1, %c0_2] : memref<784x128xf32, #tpu.memory_space<vmem>>, vector<784x128xf32>
    %cst = arith.constant dense<0.000000e+00> : vector<8x128xf32>
    %2 = tpu.matmul %0, %1, %cst {dimension_numbers = #tpu.dot_dimension_numbers<[1], [0], [0], [1], [0, 0, 1, 1], [], []>} : vector<8x784xf32>, vector<784x128xf32>, vector<8x128xf32> -> vector<8x128xf32>
    %c0_3 = arith.constant 0 : index
    %c0_4 = arith.constant 0 : index
    %3 = vector.load %arg3[%c0_3, %c0_4] : memref<1x128xf32, #tpu.memory_space<vmem>>, vector<1x128xf32>
    %4 = vector.broadcast %3 : vector<1x128xf32> to vector<8x128xf32>
    %5 = arith.addf %2, %4 : vector<8x128xf32>
    %cst_5 = arith.constant 0.000000e+00 : f32
    %6 = vector.broadcast %cst_5 : f32 to vector<8x128xf32>
    %7 = arith.maximumf %5, %6 : vector<8x128xf32>
    %c0_6 = arith.constant 0 : index
    %c0_7 = arith.constant 0 : index
    %8 = vector.load %arg4[%c0_6, %c0_7] : memref<128x16xf32, #tpu.memory_space<vmem>>, vector<128x16xf32>
    %cst_8 = arith.constant dense<0.000000e+00> : vector<8x16xf32>
    %9 = tpu.matmul %7, %8, %cst_8 {dimension_numbers = #tpu.dot_dimension_numbers<[1], [0], [0], [1], [0, 0, 1, 1], [], []>} : vector<8x128xf32>, vector<128x16xf32>, vector<8x16xf32> -> vector<8x16xf32>
    %c0_9 = arith.constant 0 : index
    %c0_10 = arith.constant 0 : index
    %10 = vector.load %arg5[%c0_9, %c0_10] : memref<1x16xf32, #tpu.memory_space<vmem>>, vector<1x16xf32>
    %11 = vector.broadcast %10 : vector<1x16xf32> to vector<8x16xf32>
    %12 = arith.addf %9, %11 : vector<8x16xf32>
    %c0_11 = arith.constant 0 : index
    %c0_12 = arith.constant 0 : index
    %13 = vector.load %arg6[%c0_11, %c0_12] : memref<8x16xf32, #tpu.memory_space<vmem>>, vector<8x16xf32>
    tpu.vector_store %arg6[%c0_11, %c0_12], %12 {strides = array<i32>} : memref<8x16xf32, #tpu.memory_space<vmem>>, vector<8x16xf32>,
    return
  }
  func.func @transform_0(%arg0: i32) -> (i32, i32) {
    %c0_i32 = arith.constant 0 : i32
    %c0_i32_0 = arith.constant 0 : i32
    return %arg0, %c0_i32 : i32, i32
  }
  func.func @transform_1(%arg0: i32) -> (i32, i32) {
    %c0_i32 = arith.constant 0 : i32
    %c0_i32_0 = arith.constant 0 : i32
    %c0_i32_1 = arith.constant 0 : i32
    return %c0_i32, %c0_i32_0 : i32, i32
  }
  func.func @transform_2(%arg0: i32) -> (i32, i32) {
    %c0_i32 = arith.constant 0 : i32
    %c0_i32_0 = arith.constant 0 : i32
    %c0_i32_1 = arith.constant 0 : i32
    return %c0_i32, %c0_i32_0 : i32, i32
  }
  func.func @transform_3(%arg0: i32) -> (i32, i32) {
    %c0_i32 = arith.constant 0 : i32
    %c0_i32_0 = arith.constant 0 : i32
    %c0_i32_1 = arith.constant 0 : i32
    return %c0_i32, %c0_i32_0 : i32, i32
  }
  func.func @transform_4(%arg0: i32) -> (i32, i32) {
    %c0_i32 = arith.constant 0 : i32
    %c0_i32_0 = arith.constant 0 : i32
    %c0_i32_1 = arith.constant 0 : i32
    return %c0_i32, %c0_i32_0 : i32, i32
  }
  func.func @transform_5(%arg0: i32) -> (i32, i32) {
    %c0_i32 = arith.constant 0 : i32
    %c0_i32_0 = arith.constant 0 : i32
    return %arg0, %c0_i32 : i32, i32
  }
}

</mosaic_0001>

<bundles_post_ra>
// kernel: tpu_custom_call.1
= control target key start
LH: loop header
LB: loop body
LE: loop exit
PB: predicated region body
PF: predicated region fallthrough
CT: control target
= control target key end

     0   :  { %10 = vsyncpa [#allocation3], 0  ;;  %s900_s0 = inlined_call_operand.vmem [shape: f32[8,784], index: 0, kind: input, shape index: {}]   ;;  %s901_s1 = inlined_call_operand.hbm [shape: f32[784,128], index: 1, kind: input, shape index: {}]   ;;  %s902_s2 = inlined_call_operand.vmem [shape: f32[1,128], index: 2, kind: input, shape index: {}]   ;;  %s903_s3 = inlined_call_operand.vmem [shape: f32[128,16], index: 3, kind: input, shape index: {}]   ;;  %s904_s4 = inlined_call_operand.vmem [shape: f32[1,16], index: 4, kind: input, shape index: {}]   ;;  %s905_s5 = inlined_call_operand.hbm [shape: f32[8,16], index: 5, kind: output, shape index: {}]  }
   0x1   :  { %11 = vsyncpa [#allocation4], 0  ;;  %s761_s18 = smov [#allocation2]  }
   0x2   :  { %s19_s19 = sshll.u32 %s761_s18, 4  ;;  %s20_s19 = int_to_ptr.vmem [resolvable:$true] %s19_s19 }
   0x3   :  { %s725_s20 = scalar_lea.vmem %s20_s19, 12544  ;;  %p730_p1 = scmp.lt.s32.totalorder %s20_s19, %s20_s19 }
   0x4   :  { %p726_p0 = scmp.ne.s32.totalorder %s20_s19, %s725_s20  ;;  %p731_p2 = scmp.lt.s32.totalorder %s725_s20, %s725_s20 }
   0x6   :  { %p732_p3 = por %p731_p2, %p730_p1 }
   0x8   :  { %p733_p4 = pnand %p732_p3, %p726_p0 }
   0xa   :  { %736 = shalt.err (!%p733_p4)
}
   0xb   :  { %s762_s21 = smov 128   ;;  %s763_s22 = smov 8  }
   0xc   :  { %25 = dma.hbm_to_vmem [thread:$0]  %s901_s1, 12544, %s20_s19, [#allocation3], %s762_s21, %s762_s21, %s763_s22  }
   0xd   :  { %757 = dma.done.wait [#allocation3], 12544  }
   0xe   :  { %758 = vsyncadd [#allocation3], 4294954752  ;;  %v73_v0 = vld [vmem:[#allocation2 + $0xf8] sm:$0xff]  ;;  %v72_v2 = vld [vmem:[#allocation2 + $0xf0] sm:$0xff]  ;;  %vm147_vm0 = vcmask 130048   ;;  %vm765_vm1 = vmmov 0  }
   0xf   :  { %v57_v1 = vld [vmem:[#allocation2 + $0x78] sm:$0xff]  ;;  %544 = vmatprep.subr.mxu0 %v73_v0  ;;  %v56_v4 = vld [vmem:[#allocation2 + $0x70] sm:$0xff]  ;;  %v71_v6 = vld [vmem:[#allocation2 + $0xe8] sm:$0xff]  ;;  %s766_s20 = smov [#allocation5]  }
  0x10   :  { %v105_v3 = vld [vmem:[#allocation2 + $0x1f8] sm:$0xff]  ;;  %545 = vmatpush3.msra.mxu0 %v57_v1  ;;  %v104_v7 = vld [vmem:[#allocation2 + $0x1f0] sm:$0xff]  ;;  %v55_v8 = vld [vmem:[#allocation2 + $0x68] sm:$0xff]  ;;  %s532_s21 = sshll.u32 %s766_s20, 4  ;;  %s533_s21 = int_to_ptr.vmem [resolvable:$true] %s532_s21 }
  0x11   :  { %v89_v5 = vld [vmem:[#allocation2 + $0x178] sm:$0xff]  ;;  %579 = vmatprep.subr.mxu1 %v105_v3  ;;  %546 = vmatprep.subr.mxu0 %v72_v2  ;;  %v88_v9 = vld [vmem:[#allocation2 + $0x170] sm:$0xff]  ;;  %v103_v10 = vld [vmem:[#allocation2 + $0x1e8] sm:$0xff]  ;;  %p742_p6 = scmp.lt.s32.totalorder %s533_s21, %s533_s21 }
  0x12   :  { %580 = vmatpush3.msra.mxu1 %v89_v5  ;;  %547 = vmatpush3.msra.mxu0 %v56_v4  ;;  %v70_v11 = vld [vmem:[#allocation2 + $0xe0] sm:$0xff]  ;;  %v87_v12 = vld [vmem:[#allocation2 + $0x168] sm:$0xff]  ;;  %v69_v15 = vld [vmem:[#allocation2 + $0xd8] sm:$0xff] }
  0x13   :  { %581 = vmatprep.subr.mxu1 %v104_v7  ;;  %548 = vmatprep.subr.mxu0 %v71_v6  ;;  %v54_v13 = vld [vmem:[#allocation2 + $0x60] sm:$0xff]  ;;  %v53_v17 = vld [vmem:[#allocation2 + $0x58] sm:$0xff]  ;;  %v68_v19 = vld [vmem:[#allocation2 + $0xd0] sm:$0xff] }
  0x14   :  { %582 = vmatpush3.msra.mxu1 %v88_v9  ;;  %v102_v14 = vld [vmem:[#allocation2 + $0x1e0] sm:$0xff]  ;;  %549 = vmatpush3.msra.mxu0 %v55_v8  ;;  %v101_v18 = vld [vmem:[#allocation2 + $0x1d8] sm:$0xff]  ;;  %v52_v21 = vld [vmem:[#allocation2 + $0x50] sm:$0xff] }
  0x15   :  { %583 = vmatprep.subr.mxu1 %v103_v10  ;;  %v86_v16 = vld [vmem:[#allocation2 + $0x160] sm:$0xff]  ;;  %550 = vmatprep.subr.mxu0 %v70_v11  ;;  %v85_v20 = vld [vmem:[#allocation2 + $0x158] sm:$0xff]  ;;  %v100_v22 = vld [vmem:[#allocation2 + $0x1d0] sm:$0xff] }
  0x16   :  { %584 = vmatpush3.msra.mxu1 %v87_v12  ;;  %551 = vmatpush3.msra.mxu0 %v54_v13  ;;  %v67_v23 = vld [vmem:[#allocation2 + $0xc8] sm:$0xff]  ;;  %v84_v24 = vld [vmem:[#allocation2 + $0x150] sm:$0xff]  ;;  %v66_v27 = vld [vmem:[#allocation2 + $0xc0] sm:$0xff] }
  0x17   :  { %585 = vmatprep.subr.mxu1 %v102_v14  ;;  %552 = vmatprep.subr.mxu0 %v69_v15  ;;  %v51_v25 = vld [vmem:[#allocation2 + $0x48] sm:$0xff]  ;;  %v50_v29 = vld [vmem:[#allocation2 + $0x40] sm:$0xff]  ;;  %v65_v31 = vld [vmem:[#allocation2 + $0xb8] sm:$0xff]  ;;  %v764_v14 = vmov 0.0  }
  0x18   :  { %586 = vmatpush3.msra.mxu1 %v86_v16  ;;  %553 = vmatpush3.msra.mxu0 %v53_v17  ;;  %v99_v26 = vld [vmem:[#allocation2 + $0x1c8] sm:$0xff]  ;;  %v98_v30 = vld [vmem:[#allocation2 + $0x1c0] sm:$0xff]  ;;  %v49_v33 = vld [vmem:[#allocation2 + $0x38] sm:$0xff] }
  0x19   :  { %587 = vmatprep.subr.mxu1 %v101_v18  ;;  %554 = vmatprep.subr.mxu0 %v68_v19  ;;  %v83_v28 = vld [vmem:[#allocation2 + $0x148] sm:$0xff]  ;;  %v82_v32 = vld [vmem:[#allocation2 + $0x140] sm:$0xff]  ;;  %v97_v34 = vld [vmem:[#allocation2 + $0x1b8] sm:$0xff] }
  0x1a   :  { %588 = vmatpush3.msra.mxu1 %v85_v20  ;;  %555 = vmatpush3.msra.mxu0 %v52_v21  ;;  %v64_v35 = vld [vmem:[#allocation2 + $0xb0] sm:$0xff]  ;;  %v81_v36 = vld [vmem:[#allocation2 + $0x138] sm:$0xff]  ;;  %v63_v39 = vld [vmem:[#allocation2 + $0xa8] sm:$0xff] }
  0x1b   :  { %589 = vmatprep.subr.mxu1 %v100_v22  ;;  %556 = vmatprep.subr.mxu0 %v67_v23  ;;  %v48_v37 = vld [vmem:[#allocation2 + $0x30] sm:$0xff]  ;;  %v47_v41 = vld [vmem:[#allocation2 + $0x28] sm:$0xff]  ;;  %v62_v43 = vld [vmem:[#allocation2 + $0xa0] sm:$0xff] }
  0x1c   :  { %590 = vmatpush3.msra.mxu1 %v84_v24  ;;  %557 = vmatpush3.msra.mxu0 %v51_v25  ;;  %v96_v38 = vld [vmem:[#allocation2 + $0x1b0] sm:$0xff]  ;;  %v95_v42 = vld [vmem:[#allocation2 + $0x1a8] sm:$0xff]  ;;  %v46_v45 = vld [vmem:[#allocation2 + $0x20] sm:$0xff] }
  0x1d   :  { %591 = vmatprep.subr.mxu1 %v99_v26  ;;  %558 = vmatprep.subr.mxu0 %v66_v27  ;;  %v80_v40 = vld [vmem:[#allocation2 + $0x130] sm:$0xff]  ;;  %v79_v44 = vld [vmem:[#allocation2 + $0x128] sm:$0xff]  ;;  %v94_v46 = vld [vmem:[#allocation2 + $0x1a0] sm:$0xff] }
  0x1e   :  { %592 = vmatpush3.msra.mxu1 %v83_v28  ;;  %559 = vmatpush3.msra.mxu0 %v50_v29  ;;  %v61_v47 = vld [vmem:[#allocation2 + $0x98] sm:$0xff]  ;;  %v78_v48 = vld [vmem:[#allocation2 + $0x120] sm:$0xff]  ;;  %v60_v51 = vld [vmem:[#allocation2 + $0x90] sm:$0xff] }
  0x1f   :  { %593 = vmatprep.subr.mxu1 %v98_v30  ;;  %560 = vmatprep.subr.mxu0 %v65_v31  ;;  %v45_v49 = vld [vmem:[#allocation2 + $0x18] sm:$0xff]  ;;  %v44_v53 = vld [vmem:[#allocation2 + $0x10] sm:$0xff]  ;;  %v59_v55 = vld [vmem:[#allocation2 + $0x88] sm:$0xff] }
  0x20   :  { %594 = vmatpush3.msra.mxu1 %v82_v32  ;;  %561 = vmatpush3.msra.mxu0 %v49_v33  ;;  %v93_v50 = vld [vmem:[#allocation2 + $0x198] sm:$0xff]  ;;  %v92_v54 = vld [vmem:[#allocation2 + $0x190] sm:$0xff]  ;;  %v43_v57 = vld [vmem:[#allocation2 + $0x8] sm:$0xff] }
  0x21   :  { %595 = vmatprep.subr.mxu1 %v97_v34  ;;  %562 = vmatprep.subr.mxu0 %v64_v35  ;;  %v77_v52 = vld [vmem:[#allocation2 + $0x118] sm:$0xff]  ;;  %v76_v56 = vld [vmem:[#allocation2 + $0x110] sm:$0xff]  ;;  %v91_v58 = vld [vmem:[#allocation2 + $0x188] sm:$0xff] }
  0x22   :  { %596 = vmatpush3.msra.mxu1 %v81_v36  ;;  %563 = vmatpush3.msra.mxu0 %v48_v37  ;;  %v58_v59 = vld [vmem:[#allocation2 + $0x80] sm:$0xff]  ;;  %v36_v60 = vld [vmem:[%s900_s0 + $0x8] sm:$0xff]  ;;  %v137_v1 = vld [vmem:[#allocation2 + $0x2f8] sm:$0xff] }
  0x23   :  { %597 = vmatprep.subr.mxu1 %v96_v38  ;;  %564 = vmatprep.subr.mxu0 %v63_v39  ;;  %v42_v61 = vld [vmem:[#allocation2] sm:$0xff]  ;;  %v75_v62 = vld [vmem:[#allocation2 + $0x108] sm:$0xff]  ;;  %v38_v3 = vld [vmem:[%s900_s0 + $0x18] sm:$0xff] }
  0x24   :  { %598 = vmatpush3.msra.mxu1 %v80_v40  ;;  %565 = vmatpush3.msra.mxu0 %v47_v41  ;;  %v35_v63 = vld [vmem:[%s900_s0] sm:$0xff]  ;;  %v121_v4 = vld [vmem:[#allocation2 + $0x278] sm:$0xff]  ;;  %v37_v5 = vld [vmem:[%s900_s0 + $0x10] sm:$0xff] }
  0x25   :  { %599 = vmatprep.subr.mxu1 %v95_v42  ;;  %566 = vmatprep.subr.mxu0 %v62_v43  ;;  %v90_v0 = vld [vmem:[#allocation2 + $0x180] sm:$0xff]  ;;  %v136_v6 = vld [vmem:[#allocation2 + $0x2f0] sm:$0xff]  ;;  %v40_v8 = vld [vmem:[%s900_s0 + $0x28] sm:$0xff] }
  0x26   :  { %600 = vmatpush3.msra.mxu1 %v79_v44  ;;  %567 = vmatpush3.msra.mxu0 %v46_v45  ;;  %v74_v2 = vld [vmem:[#allocation2 + $0x100] sm:$0xff]  ;;  %v120_v7 = vld [vmem:[#allocation2 + $0x270] sm:$0xff]  ;;  %v135_v9 = vld [vmem:[#allocation2 + $0x2e8] sm:$0xff] }
  0x27   :  { %601 = vmatprep.subr.mxu1 %v94_v46  ;;  %568 = vmatprep.subr.mxu0 %v61_v47  ;;  %v119_v10 = vld [vmem:[#allocation2 + $0x268] sm:$0xff]  ;;  %v134_v12 = vld [vmem:[#allocation2 + $0x2e0] sm:$0xff]  ;;  %v133_v16 = vld [vmem:[#allocation2 + $0x2d8] sm:$0xff] }
  0x28   :  { %602 = vmatpush3.msra.mxu1 %v78_v48  ;;  %569 = vmatpush3.msra.mxu0 %v45_v49  ;;  %v139_v11 = vld [vmem:[#allocation2 + $0x308] sm:$0xff]  ;;  %v118_v13 = vld [vmem:[#allocation2 + $0x260] sm:$0xff]  ;;  %v117_v17 = vld [vmem:[#allocation2 + $0x258] sm:$0xff] }
  0x29   :  { %603 = vmatprep.subr.mxu1 %v93_v50  ;;  %570 = vmatprep.subr.mxu0 %v60_v51  ;;  %v138_v15 = vld [vmem:[#allocation2 + $0x300] sm:$0xff]  ;;  %v41_v18 = vld [vmem:[%s900_s0 + $0x30] sm:$0xff]  ;;  %v131_v21 = vld [vmem:[#allocation2 + $0x2c8] sm:$0xff] }
  0x2a   :  { %604 = vmatpush3.msra.mxu1 %v77_v52  ;;  %571 = vmatpush3.msra.mxu0 %v44_v53  ;;  %v132_v19 = vld [vmem:[#allocation2 + $0x2d0] sm:$0xff]  ;;  %v115_v22 = vld [vmem:[#allocation2 + $0x248] sm:$0xff]  ;;  %v130_v23 = vld [vmem:[#allocation2 + $0x2c0] sm:$0xff] }
  0x2b   :  { %605 = vmatprep.subr.mxu1 %v92_v54  ;;  %572 = vmatprep.subr.mxu0 %v59_v55  ;;  %v116_v20 = vld [vmem:[#allocation2 + $0x250] sm:$0xff]  ;;  %v114_v24 = vld [vmem:[#allocation2 + $0x240] sm:$0xff]  ;;  %v129_v25 = vld [vmem:[#allocation2 + $0x2b8] sm:$0xff] }
  0x2c   :  { %606 = vmatpush3.msra.mxu1 %v76_v56  ;;  %573 = vmatpush3.msra.mxu0 %v43_v57  ;;  %v113_v26 = vld [vmem:[#allocation2 + $0x238] sm:$0xff]  ;;  %v128_v27 = vld [vmem:[#allocation2 + $0x2b0] sm:$0xff]  ;;  %v127_v29 = vld [vmem:[#allocation2 + $0x2a8] sm:$0xff] }
  0x2d   :  { %607 = vmatprep.subr.mxu1 %v91_v58  ;;  %574 = vmatprep.subr.mxu0 %v58_v59  ;;  %v112_v28 = vld [vmem:[#allocation2 + $0x230] sm:$0xff]  ;;  %v111_v30 = vld [vmem:[#allocation2 + $0x228] sm:$0xff]  ;;  %v126_v31 = vld [vmem:[#allocation2 + $0x2a0] sm:$0xff] }
  0x2e   :  { %215 = vmatprep.mubr.f32.mxu0 %v36_v60  ;;  %575 = vmatpush3.msra.mxu0 %v42_v61  ;;  %v110_v32 = vld [vmem:[#allocation2 + $0x220] sm:$0xff]  ;;  %v125_v33 = vld [vmem:[#allocation2 + $0x298] sm:$0xff]  ;;  %v124_v35 = vld [vmem:[#allocation2 + $0x290] sm:$0xff] }
  0x2f   :  { %608 = vmatpush3.msra.mxu1 %v75_v62  ;;  %216 = vmatmul.mubr.f32.vlgmr.msra.gmra.mxu0 %v35_v63  ;;  %v109_v34 = vld [vmem:[#allocation2 + $0x218] sm:$0xff]  ;;  %v108_v36 = vld [vmem:[#allocation2 + $0x210] sm:$0xff]  ;;  %v123_v37 = vld [vmem:[#allocation2 + $0x288] sm:$0xff] }
  0x30   :  { %609 = vmatprep.subr.mxu1 %v90_v0  ;;  %614 = vmatprep.subr.mxu0 %v137_v1  ;;  %v107_v38 = vld [vmem:[#allocation2 + $0x208] sm:$0xff]  ;;  %v122_v39 = vld [vmem:[#allocation2 + $0x280] sm:$0xff]  ;;  %v447_v42 = vld [vmem:[%s903_s3 + $0x78] sm:$0xff] }
  0x31   :  { %610 = vmatpush3.msra.mxu1 %v74_v2  ;;  %285 = vmatprep.mubr.f32.mxu1 %v38_v3  ;;  %v106_v40 = vld [vmem:[#allocation2 + $0x200] sm:$0xff]  ;;  %v446_v43 = vld [vmem:[%s903_s3 + $0x70] sm:$0xff]  ;;  %v445_v44 = vld [vmem:[%s903_s3 + $0x68] sm:$0xff] }
  0x32   :  { %615 = vmatpush3.msra.mxu0 %v121_v4  ;;  %286 = vmatmul.mubr.f32.vlgmr.msra.gmra.mxu1 %v37_v5  ;;  %v39_v41 = vld [vmem:[%s900_s0 + $0x20] sm:$0xff]  ;;  %v443_v46 = vld [vmem:[%s903_s3 + $0x58] sm:$0xff]  ;;  %v442_v47 = vld [vmem:[%s903_s3 + $0x50] sm:$0xff] }
  0x33   :  { %616 = vmatprep.subr.mxu0 %v136_v6  ;;  %355 = vmatprep.mubr.f32.mxu0 %v40_v8  ;;  %v444_v45 = vld [vmem:[%s903_s3 + $0x60] sm:$0xff]  ;;  %v441_v48 = vld [vmem:[%s903_s3 + $0x48] sm:$0xff]  ;;  %v439_v50 = vld [vmem:[%s903_s3 + $0x38] sm:$0xff] }
  0x34   :  { %617 = vmatpush3.msra.mxu0 %v120_v7  ;;  %669 = vmatprep.subr.mxu1 %v764_v14  ;;  %v440_v49 = vld [vmem:[%s903_s3 + $0x40] sm:$0xff]  ;;  %v438_v51 = vld [vmem:[%s903_s3 + $0x30] sm:$0xff]  ;;  %v437_v52 = vld [vmem:[%s903_s3 + $0x28] sm:$0xff] }
  0x35   :  { %618 = vmatprep.subr.mxu0 %v135_v9  ;;  %670 = vmatpush3.msra.mxu1 %v139_v11  ;;  %v436_v53 = vld [vmem:[%s903_s3 + $0x20] sm:$0xff]  ;;  %v435_v54 = vld [vmem:[%s903_s3 + $0x18] sm:$0xff]  ;;  %v434_v55 = vld [vmem:[%s903_s3 + $0x10] sm:$0xff] }
  0x36   :  { %619 = vmatpush3.msra.mxu0 %v119_v10  ;;  %671 = vmatprep.subr.mxu1 %v764_v14  ;;  %v433_v56 = vld [vmem:[%s903_s3 + $0x8] sm:$0xff]  ;;  %v432_v57 = vld [vmem:[%s903_s3] sm:$0xff] }
  0x37   :  { %620 = vmatprep.subr.mxu0 %v134_v12  ;;  %672 = vmatpush3.msra.mxu1 %v138_v15  ;;  %v541_v1 = vld [vmem:[%s902_s2] ss:$0 sm:$0xff]  ;;  %s737_s2 = scalar_lea.vmem %s533_s21, 128 }
  0x38   :  { %621 = vmatpush3.msra.mxu0 %v118_v13  ;;  %673 = vmatprep.mubr.msk.f32.mxu1 %vm765_vm1, %v764_v14  ;;  %v543_v11 = vld [vmem:[%s904_s4] ss:$0 sm:$0xff]  ;;  %p738_p5 = scmp.ne.s32.totalorder %s533_s21, %s737_s2  ;;  %p743_p7 = scmp.lt.s32.totalorder %s737_s2, %s737_s2 }
  0x39   :  { %622 = vmatprep.subr.mxu0 %v133_v16  ;;  %674 = vmatmul.mubr.msk.f32.vlgmr.msra.gmra.mxu1 %vm147_vm0, %v41_v18 }
  0x3a   :  { %623 = vmatpush3.msra.mxu0 %v117_v17  ;;  %676 = vmatprep.subr.mxu1 %v764_v14  ;;  %p744_p8 = por %p743_p7, %p742_p6 }
  0x3b   :  { %624 = vmatprep.subr.mxu0 %v132_v19  ;;  %708 = vmatprep.mubr.msk.f32.mxu1 %vm765_vm1, %v764_v14 }
  0x3c   :  { %625 = vmatpush3.msra.mxu0 %v116_v20  ;;  %677 = vmatpush3.msra.mxu1 %v447_v42  ;;  %p745_p9 = pnand %p744_p8, %p738_p5 }
  0x3d   :  { %626 = vmatprep.subr.mxu0 %v131_v21  ;;  %678 = vmatprep.subr.mxu1 %v764_v14 }
  0x3e   :  { %627 = vmatpush3.msra.mxu0 %v115_v22  ;;  %679 = vmatpush3.msra.mxu1 %v446_v43 }
  0x3f   :  { %628 = vmatprep.subr.mxu0 %v130_v23  ;;  %680 = vmatprep.subr.mxu1 %v764_v14 }
  0x40   :  { %629 = vmatpush3.msra.mxu0 %v114_v24  ;;  %681 = vmatpush3.msra.mxu1 %v445_v44 }
  0x41   :  { %630 = vmatprep.subr.mxu0 %v129_v25  ;;  %682 = vmatprep.subr.mxu1 %v764_v14 }
  0x42   :  { %631 = vmatpush3.msra.mxu0 %v113_v26  ;;  %683 = vmatpush3.msra.mxu1 %v444_v45 }
  0x43   :  { %632 = vmatprep.subr.mxu0 %v128_v27  ;;  %684 = vmatprep.subr.mxu1 %v764_v14 }
  0x44   :  { %633 = vmatpush3.msra.mxu0 %v112_v28  ;;  %685 = vmatpush3.msra.mxu1 %v443_v46 }
  0x45   :  { %634 = vmatprep.subr.mxu0 %v127_v29  ;;  %686 = vmatprep.subr.mxu1 %v764_v14 }
  0x46   :  { %635 = vmatpush3.msra.mxu0 %v111_v30  ;;  %687 = vmatpush3.msra.mxu1 %v442_v47 }
  0x47   :  { %636 = vmatprep.subr.mxu0 %v126_v31  ;;  %688 = vmatprep.subr.mxu1 %v764_v14 }
  0x48   :  { %637 = vmatpush3.msra.mxu0 %v110_v32  ;;  %689 = vmatpush3.msra.mxu1 %v441_v48 }
  0x49   :  { %638 = vmatprep.subr.mxu0 %v125_v33  ;;  %690 = vmatprep.subr.mxu1 %v764_v14 }
  0x4a   :  { %639 = vmatpush3.msra.mxu0 %v109_v34  ;;  %691 = vmatpush3.msra.mxu1 %v440_v49 }
  0x4b   :  { %640 = vmatprep.subr.mxu0 %v124_v35  ;;  %692 = vmatprep.subr.mxu1 %v764_v14 }
  0x4c   :  { %641 = vmatpush3.msra.mxu0 %v108_v36  ;;  %693 = vmatpush3.msra.mxu1 %v439_v50 }
  0x4d   :  { %642 = vmatprep.subr.mxu0 %v123_v37  ;;  %694 = vmatprep.subr.mxu1 %v764_v14 }
  0x4e   :  { %643 = vmatpush3.msra.mxu0 %v107_v38  ;;  %695 = vmatpush3.msra.mxu1 %v438_v51 }
  0x4f   :  { %644 = vmatprep.subr.mxu0 %v122_v39  ;;  %696 = vmatprep.subr.mxu1 %v764_v14 }
  0x50   :  { %645 = vmatpush3.msra.mxu0 %v106_v40  ;;  %697 = vmatpush3.msra.mxu1 %v437_v52 }
  0x51   :  { %356 = vmatmul.mubr.f32.vlgmr.msra.gmra.mxu0 %v39_v41  ;;  %698 = vmatprep.subr.mxu1 %v764_v14 }
  0x52   :  { %699 = vmatpush3.msra.mxu1 %v436_v53 }
  0x53   :  { %700 = vmatprep.subr.mxu1 %v764_v14 }
  0x54   :  { %701 = vmatpush3.msra.mxu1 %v435_v54 }
  0x55   :  { %702 = vmatprep.subr.mxu1 %v764_v14 }
  0x56   :  { %703 = vmatpush3.msra.mxu1 %v434_v55 }
  0x57   :  { %704 = vmatprep.subr.mxu1 %v764_v14 }
  0x58   :  { %705 = vmatpush3.msra.mxu1 %v433_v56 }
  0x59   :  { %706 = vmatprep.subr.mxu1 %v764_v14 }
  0x5a   :  { %707 = vmatpush3.msra.mxu1 %v432_v57 }
  0xef   :  { %v576_v62 = vpop.f32.mrf.mxu0 }
  0xf1   :  { %v577_v63 = vpop.f32.mrf.mxu0 }
  0xf2   :  { %v611_v58 = vpop.f32.mrf.mxu1  ;;  %v578_v0 = vadd.f32 %v577_v63, %v576_v62 }
  0xf4   :  { %v612_v59 = vpop.f32.mrf.mxu1  ;;  %v218_v2 = vadd.f32 %v578_v0, %v541_v1 }
  0xf5   :  { %v613_v3 = vadd.f32 %v612_v59, %v611_v58 }
  0xf7   :  { %v288_v6 = vadd.f32 %v613_v3, %v218_v2 }
  0xf9   :  { %v427_v60 = vpop.f32.mrf.mxu1 }
  0xfb   :  { %v675_v61 = vpop.f32.mrf.mxu1 }
 0x111   :  { %v646_v4 = vpop.f32.mrf.mxu0 }
 0x113   :  { %v647_v5 = vpop.f32.mrf.mxu0 }
 0x114   :  { %v648_v7 = vadd.f32 %v647_v5, %v646_v4 }
 0x116   :  { %v358_v8 = vadd.f32 %v648_v7, %v288_v6 }
 0x118   :  { %v428_v9 = vadd.f32 %v427_v60, %v358_v8 }
 0x11a   :  { %v431_v10 = vmax.f32 %v428_v9, 0.0 }
 0x11c   :  { %709 = vmatmul.mubr.f32.vlgmr.msra.gmra.mxu1 %v431_v10 }
 0x1dc   :  { %v521_v12 = vpop.f32.mrf.mxu1 }
 0x1dd   :  { %v522_v13 = vadd.f32 %v543_v11, %v521_v12 }
 0x1de   :  { %v710_v14 = vpop.f32.mrf.mxu1 }
 0x1df   :  { %525 = vst.msk [vmem:[#allocation5] sm:$0xff] %vm147_vm0, %v522_v13 }
 0x1e0   :  { %748 = shalt.err (!%p745_p9)
}
 0x1e1   :  { %535 = dma.vmem_to_hbm [thread:$0]  %s533_s21, 128, %s905_s5, [#allocation4]  }
 0x1e2   :  { %759 = dma.done.wait [#allocation4], 128  }
 0x1e3   :  { %760 = vsyncadd [#allocation4], 4294967168 }
 0x1e4   :  { %539 = vsyncpa [#allocation3], 1 }
 0x1e5   :  { %540 = vsyncpa [#allocation4], 1 }

</bundles_post_ra>
